<compile_context>
chip_gen: v6e
topology: v6e:2x2x1
jax: 0.10.0
libtpu: 0.0.40
codegen_flags: <defaults>
</compile_context>

<pallas_src>
import functools

import jax
import jax.numpy as jnp
from jax.experimental import pallas as pl
from jax.experimental.pallas import tpu as pltpu

IN_F = 2
HIDDEN = 8
OUT_F = 2
LANES = 128
CHUNK = 32  # sublane rows processed per inner-loop step (multiple of 8)

# Flat SMEM parameter packing (42 f32 scalars).
_W1_OFF = 0                          # w1[i, j] -> _W1_OFF + i * HIDDEN + j   (16)
_B1_OFF = _W1_OFF + IN_F * HIDDEN    # b1[j]    -> _B1_OFF + j                 (8)
_W2_OFF = _B1_OFF + HIDDEN           # w2[j, i] -> _W2_OFF + j * OUT_F + i    (16)
_B2_OFF = _W2_OFF + HIDDEN * OUT_F   # b2[i]    -> _B2_OFF + i                 (2)
N_PARAMS = _B2_OFF + OUT_F           # 42


def _make_kernel(s_tile, chunk, use_bf16):
    n_chunks = s_tile // chunk

    def kernel(p_ref, x_ref, o_ref):
        # p_ref: (42,) f32 in SMEM (scalar prefetch, resident across all grid steps)
        # x_ref: (IN_F, S_TILE, 128) f32 in VMEM   (batch on sublanes x lanes)
        # o_ref: (OUT_F, S_TILE, 128) f32 in VMEM
        @pl.loop(0, n_chunks)
        def _(c):
            start = pl.multiple_of(c * chunk, chunk)
            sl = pl.ds(start, chunk)
            x0 = x_ref[0, sl, :]                     # (chunk, 128)
            x1 = x_ref[1, sl, :]
            if use_bf16:                             # v6e/v7x only (no bf16 VPU on v5e)
                x0 = x0.astype(jnp.bfloat16)
                x1 = x1.astype(jnp.bfloat16)

            y0 = jnp.zeros((chunk, LANES), jnp.float32)
            y1 = jnp.zeros((chunk, LANES), jnp.float32)
            # Fully unrolled over 8 hidden units: vector-scalar VPU FMAs + max.
            for j in range(HIDDEN):
                w1_0j = p_ref[_W1_OFF + 0 * HIDDEN + j]
                w1_1j = p_ref[_W1_OFF + 1 * HIDDEN + j]
                b1_j = p_ref[_B1_OFF + j]
                if use_bf16:
                    h = jnp.maximum(
                        w1_0j.astype(jnp.bfloat16) * x0
                        + w1_1j.astype(jnp.bfloat16) * x1
                        + b1_j.astype(jnp.bfloat16),
                        0.0,
                    )
                else:
                    h = jnp.maximum(w1_0j * x0 + w1_1j * x1 + b1_j, 0.0)
                # f32 scalar * h promotes to f32 -> accumulation stays f32.
                y0 = y0 + p_ref[_W2_OFF + j * OUT_F + 0] * h
                y1 = y1 + p_ref[_W2_OFF + j * OUT_F + 1] * h

            o_ref[0, sl, :] = y0 + p_ref[_B2_OFF + 0]
            o_ref[1, sl, :] = y1 + p_ref[_B2_OFF + 1]

    return kernel


def _round_up(a, b):
    return ((a + b - 1) // b) * b


@functools.partial(jax.jit, static_argnames=("target_s_tile", "use_bf16"))
def delta_nn_forward(x, w1, b1, w2, b2, *, target_s_tile=512, use_bf16=False):
    """x: (B, 2) f32; w1: (2, 8); b1: (8,); w2: (8, 2); b2: (2,).  Returns (B, 2) f32.

    Computes y = relu(x @ w1 + b1) @ w2 + b2 (PyTorch nn.Linear semantics with weights
    stored as (in_features, out_features), i.e. w = torch_weight.T).
    """
    assert target_s_tile % CHUNK == 0
    B = x.shape[0]

    # --- choose batch tiling (all static, derived from the trace-time shape) ---
    s_needed = _round_up(max(pl.cdiv(B, LANES), 1), CHUNK)     # sublane rows needed
    s_tile = min(target_s_tile, s_needed)
    # v7x: prefer >=2 grid steps when there is enough data so both TCs get work.
    if s_needed // s_tile < 2 and s_needed >= 2 * CHUNK:
        s_tile = _round_up(pl.cdiv(s_needed, 2), CHUNK)
    S = _round_up(s_needed, s_tile)
    num_tiles = S // s_tile
    b_pad = S * LANES

    # --- wrapper-side layout plumbing (pad only when required) ---
    xt = x.T.astype(jnp.float32)                               # (2, B)
    if b_pad != B:
        xt = jnp.pad(xt, ((0, 0), (0, b_pad - B)))
    xt = xt.reshape(IN_F, S, LANES)
    # TODO(synk): keep activations feature-major (2, S, 128) across the surrounding model
    # to avoid the transpose/pad passes dominating end-to-end time for this mem-bound op.

    params = jnp.concatenate(
        [w1.reshape(-1), b1.reshape(-1), w2.reshape(-1), b2.reshape(-1)]
    ).astype(jnp.float32)

    cost = pl.CostEstimate(
        flops=2 * B * (IN_F * HIDDEN + HIDDEN * OUT_F),
        transcendentals=0,
        bytes_accessed=4 * b_pad * (IN_F + OUT_F) + 4 * N_PARAMS,
    )

    yt = pl.pallas_call(
        _make_kernel(s_tile, CHUNK, use_bf16),
        out_shape=jax.ShapeDtypeStruct((OUT_F, S, LANES), jnp.float32),
        grid_spec=pltpu.PrefetchScalarGridSpec(
            num_scalar_prefetch=1,            # params -> SMEM once, resident for all steps
            grid=(num_tiles,),
            in_specs=[
                pl.BlockSpec((IN_F, s_tile, LANES), lambda i, p: (0, i, 0)),
            ],
            out_specs=pl.BlockSpec((OUT_F, s_tile, LANES), lambda i, p: (0, i, 0)),
        ),
        compiler_params=pltpu.CompilerParams(
            dimension_semantics=("parallel",),       # independent batch tiles
            vmem_limit_bytes=32 * 1024 * 1024,        # safe within v7x's 64 MiB VMEM
        ),
        cost_estimate=cost,
    )(params, xt)

    return yt.reshape(OUT_F, b_pad)[:, :B].T


def init_params(key):
    """Deterministic init mimicking nn.Linear default (uniform in +/- 1/sqrt(fan_in))."""
    k1, k2, k3, k4 = jax.random.split(key, 4)
    bound1 = 1.0 / jnp.sqrt(2.0)
    w1 = jax.random.uniform(k1, (IN_F, HIDDEN), jnp.float32, -bound1, bound1)
    b1 = jax.random.uniform(k2, (HIDDEN,), jnp.float32, -bound1, bound1)
    bound2 = 1.0 / jnp.sqrt(8.0)
    w2 = jax.random.uniform(k3, (HIDDEN, OUT_F), jnp.float32, -bound2, bound2)
    b2 = jax.random.uniform(k4, (OUT_F,), jnp.float32, -bound2, bound2)
    return w1, b1, w2, b2


def _reference(x, w1, b1, w2, b2):
    return jnp.maximum(x @ w1 + b1, 0.0) @ w2 + b2


if __name__ == "__main__":
    key = jax.random.PRNGKey(0)
    kp, kx1, kx2 = jax.random.split(key, 3)
    w1, b1, w2, b2 = init_params(kp)

    ok = True

    # Small batch of 8 samples, feature dim 2 (matches Linear(2, 8) input).
    x_small = jax.random.normal(kx1, (8, 2), jnp.float32)
    y_small = jax.block_until_ready(delta_nn_forward(x_small, w1, b1, w2, b2))
    y_small_ref = _reference(x_small, w1, b1, w2, b2)
    ok &= bool(y_small.shape == y_small_ref.shape)
    ok &= bool(jnp.allclose(y_small, y_small_ref, atol=1e-5, rtol=1e-5))

    # Moderately larger batch to exercise padding + the multi-tile (2-step grid) path.
    x_big = jax.random.normal(kx2, (16384, 2), jnp.float32)
    y_big = jax.block_until_ready(delta_nn_forward(x_big, w1, b1, w2, b2))
    y_big_ref = _reference(x_big, w1, b1, w2, b2)
    ok &= bool(y_big.shape == y_big_ref.shape)
    ok &= bool(jnp.allclose(y_big, y_big_ref, atol=1e-5, rtol=1e-5))

    assert ok, "mismatch vs pure-JAX reference"
    print("KERNEL_OK")
</pallas_src>

<mosaic_0001>
module attributes {stable_mosaic.version = 11 : i64} {
  func.func @kernel(%arg0: i32, %arg1: memref<42xf32, #tpu.memory_space<smem>>, %arg2: memref<2x32x128xf32, #tpu.memory_space<vmem>>, %arg3: memref<2x32x128xf32, #tpu.memory_space<vmem>>) attributes {dimension_semantics = [#tpu.dimension_semantics<parallel>], iteration_bounds = array<i64: 1>, scalar_prefetch = 1 : i64, scratch_operands = 0 : i64, tpu.core_type = #tpu.core_type<tc>, window_params = [{transform_indices = @transform_0, window_bounds = array<i64: 2, 32, 128>}, {transform_indices = @transform_1, window_bounds = array<i64: 2, 32, 128>}]} {
    %c0_i32 = arith.constant 0 : i32
    %c1_i32 = arith.constant 1 : i32
    %0 = arith.muli %c0_i32, %c1_i32 : i32
    %c0_i32_0 = arith.constant 0 : i32
    %1 = arith.addi %c0_i32_0, %0 : i32
    %c32_i32 = arith.constant 32 : i32
    %2 = arith.muli %1, %c32_i32 : i32
    %3 = tpu.assume_multiple %2, 32 : i32
    %c0 = arith.constant 0 : index
    %4 = arith.index_cast %3 : i32 to index
    %c0_1 = arith.constant 0 : index
    %5 = vector.load %arg2[%c0, %4, %c0_1] : memref<2x32x128xf32, #tpu.memory_space<vmem>>, vector<1x32x128xf32>
    %6 = vector.shape_cast %5 : vector<1x32x128xf32> to vector<32x128xf32>
    %c1 = arith.constant 1 : index
    %7 = arith.index_cast %3 : i32 to index
    %c0_2 = arith.constant 0 : index
    %8 = vector.load %arg2[%c1, %7, %c0_2] : memref<2x32x128xf32, #tpu.memory_space<vmem>>, vector<1x32x128xf32>
    %9 = vector.shape_cast %8 : vector<1x32x128xf32> to vector<32x128xf32>
    %cst = arith.constant 0.000000e+00 : f32
    %10 = vector.broadcast %cst : f32 to vector<32x128xf32>
    %cst_3 = arith.constant 0.000000e+00 : f32
    %11 = vector.broadcast %cst_3 : f32 to vector<32x128xf32>
    %c0_4 = arith.constant 0 : index
    %12 = memref.load %arg1[%c0_4] : memref<42xf32, #tpu.memory_space<smem>>
    %c8 = arith.constant 8 : index
    %13 = memref.load %arg1[%c8] : memref<42xf32, #tpu.memory_space<smem>>
    %c16 = arith.constant 16 : index
    %14 = memref.load %arg1[%c16] : memref<42xf32, #tpu.memory_space<smem>>
    %15 = vector.broadcast %12 : f32 to vector<32x128xf32>
    %16 = arith.mulf %15, %6 : vector<32x128xf32>
    %17 = vector.broadcast %13 : f32 to vector<32x128xf32>
    %18 = arith.mulf %17, %9 : vector<32x128xf32>
    %19 = arith.addf %16, %18 : vector<32x128xf32>
    %20 = vector.broadcast %14 : f32 to vector<32x128xf32>
    %21 = arith.addf %19, %20 : vector<32x128xf32>
    %cst_5 = arith.constant 0.000000e+00 : f32
    %22 = vector.broadcast %cst_5 : f32 to vector<32x128xf32>
    %23 = arith.maximumf %21, %22 : vector<32x128xf32>
    %c24 = arith.constant 24 : index
    %24 = memref.load %arg1[%c24] : memref<42xf32, #tpu.memory_space<smem>>
    %25 = vector.broadcast %24 : f32 to vector<32x128xf32>
    %26 = arith.mulf %25, %23 : vector<32x128xf32>
    %27 = arith.addf %10, %26 : vector<32x128xf32>
    %c25 = arith.constant 25 : index
    %28 = memref.load %arg1[%c25] : memref<42xf32, #tpu.memory_space<smem>>
    %29 = vector.broadcast %28 : f32 to vector<32x128xf32>
    %30 = arith.mulf %29, %23 : vector<32x128xf32>
    %31 = arith.addf %11, %30 : vector<32x128xf32>
    %c1_6 = arith.constant 1 : index
    %32 = memref.load %arg1[%c1_6] : memref<42xf32, #tpu.memory_space<smem>>
    %c9 = arith.constant 9 : index
    %33 = memref.load %arg1[%c9] : memref<42xf32, #tpu.memory_space<smem>>
    %c17 = arith.constant 17 : index
    %34 = memref.load %arg1[%c17] : memref<42xf32, #tpu.memory_space<smem>>
    %35 = vector.broadcast %32 : f32 to vector<32x128xf32>
    %36 = arith.mulf %35, %6 : vector<32x128xf32>
    %37 = vector.broadcast %33 : f32 to vector<32x128xf32>
    %38 = arith.mulf %37, %9 : vector<32x128xf32>
    %39 = arith.addf %36, %38 : vector<32x128xf32>
    %40 = vector.broadcast %34 : f32 to vector<32x128xf32>
    %41 = arith.addf %39, %40 : vector<32x128xf32>
    %cst_7 = arith.constant 0.000000e+00 : f32
    %42 = vector.broadcast %cst_7 : f32 to vector<32x128xf32>
    %43 = arith.maximumf %41, %42 : vector<32x128xf32>
    %c26 = arith.constant 26 : index
    %44 = memref.load %arg1[%c26] : memref<42xf32, #tpu.memory_space<smem>>
    %45 = vector.broadcast %44 : f32 to vector<32x128xf32>
    %46 = arith.mulf %45, %43 : vector<32x128xf32>
    %47 = arith.addf %27, %46 : vector<32x128xf32>
    %c27 = arith.constant 27 : index
    %48 = memref.load %arg1[%c27] : memref<42xf32, #tpu.memory_space<smem>>
    %49 = vector.broadcast %48 : f32 to vector<32x128xf32>
    %50 = arith.mulf %49, %43 : vector<32x128xf32>
    %51 = arith.addf %31, %50 : vector<32x128xf32>
    %c2 = arith.constant 2 : index
    %52 = memref.load %arg1[%c2] : memref<42xf32, #tpu.memory_space<smem>>
    %c10 = arith.constant 10 : index
    %53 = memref.load %arg1[%c10] : memref<42xf32, #tpu.memory_space<smem>>
    %c18 = arith.constant 18 : index
    %54 = memref.load %arg1[%c18] : memref<42xf32, #tpu.memory_space<smem>>
    %55 = vector.broadcast %52 : f32 to vector<32x128xf32>
    %56 = arith.mulf %55, %6 : vector<32x128xf32>
    %57 = vector.broadcast %53 : f32 to vector<32x128xf32>
    %58 = arith.mulf %57, %9 : vector<32x128xf32>
    %59 = arith.addf %56, %58 : vector<32x128xf32>
    %60 = vector.broadcast %54 : f32 to vector<32x128xf32>
    %61 = arith.addf %59, %60 : vector<32x128xf32>
    %cst_8 = arith.constant 0.000000e+00 : f32
    %62 = vector.broadcast %cst_8 : f32 to vector<32x128xf32>
    %63 = arith.maximumf %61, %62 : vector<32x128xf32>
    %c28 = arith.constant 28 : index
    %64 = memref.load %arg1[%c28] : memref<42xf32, #tpu.memory_space<smem>>
    %65 = vector.broadcast %64 : f32 to vector<32x128xf32>
    %66 = arith.mulf %65, %63 : vector<32x128xf32>
    %67 = arith.addf %47, %66 : vector<32x128xf32>
    %c29 = arith.constant 29 : index
    %68 = memref.load %arg1[%c29] : memref<42xf32, #tpu.memory_space<smem>>
    %69 = vector.broadcast %68 : f32 to vector<32x128xf32>
    %70 = arith.mulf %69, %63 : vector<32x128xf32>
    %71 = arith.addf %51, %70 : vector<32x128xf32>
    %c3 = arith.constant 3 : index
    %72 = memref.load %arg1[%c3] : memref<42xf32, #tpu.memory_space<smem>>
    %c11 = arith.constant 11 : index
    %73 = memref.load %arg1[%c11] : memref<42xf32, #tpu.memory_space<smem>>
    %c19 = arith.constant 19 : index
    %74 = memref.load %arg1[%c19] : memref<42xf32, #tpu.memory_space<smem>>
    %75 = vector.broadcast %72 : f32 to vector<32x128xf32>
    %76 = arith.mulf %75, %6 : vector<32x128xf32>
    %77 = vector.broadcast %73 : f32 to vector<32x128xf32>
    %78 = arith.mulf %77, %9 : vector<32x128xf32>
    %79 = arith.addf %76, %78 : vector<32x128xf32>
    %80 = vector.broadcast %74 : f32 to vector<32x128xf32>
    %81 = arith.addf %79, %80 : vector<32x128xf32>
    %cst_9 = arith.constant 0.000000e+00 : f32
    %82 = vector.broadcast %cst_9 : f32 to vector<32x128xf32>
    %83 = arith.maximumf %81, %82 : vector<32x128xf32>
    %c30 = arith.constant 30 : index
    %84 = memref.load %arg1[%c30] : memref<42xf32, #tpu.memory_space<smem>>
    %85 = vector.broadcast %84 : f32 to vector<32x128xf32>
    %86 = arith.mulf %85, %83 : vector<32x128xf32>
    %87 = arith.addf %67, %86 : vector<32x128xf32>
    %c31 = arith.constant 31 : index
    %88 = memref.load %arg1[%c31] : memref<42xf32, #tpu.memory_space<smem>>
    %89 = vector.broadcast %88 : f32 to vector<32x128xf32>
    %90 = arith.mulf %89, %83 : vector<32x128xf32>
    %91 = arith.addf %71, %90 : vector<32x128xf32>
    %c4 = arith.constant 4 : index
    %92 = memref.load %arg1[%c4] : memref<42xf32, #tpu.memory_space<smem>>
    %c12 = arith.constant 12 : index
    %93 = memref.load %arg1[%c12] : memref<42xf32, #tpu.memory_space<smem>>
    %c20 = arith.constant 20 : index
    %94 = memref.load %arg1[%c20] : memref<42xf32, #tpu.memory_space<smem>>
    %95 = vector.broadcast %92 : f32 to vector<32x128xf32>
    %96 = arith.mulf %95, %6 : vector<32x128xf32>
    %97 = vector.broadcast %93 : f32 to vector<32x128xf32>
    %98 = arith.mulf %97, %9 : vector<32x128xf32>
    %99 = arith.addf %96, %98 : vector<32x128xf32>
    %100 = vector.broadcast %94 : f32 to vector<32x128xf32>
    %101 = arith.addf %99, %100 : vector<32x128xf32>
    %cst_10 = arith.constant 0.000000e+00 : f32
    %102 = vector.broadcast %cst_10 : f32 to vector<32x128xf32>
    %103 = arith.maximumf %101, %102 : vector<32x128xf32>
    %c32 = arith.constant 32 : index
    %104 = memref.load %arg1[%c32] : memref<42xf32, #tpu.memory_space<smem>>
    %105 = vector.broadcast %104 : f32 to vector<32x128xf32>
    %106 = arith.mulf %105, %103 : vector<32x128xf32>
    %107 = arith.addf %87, %106 : vector<32x128xf32>
    %c33 = arith.constant 33 : index
    %108 = memref.load %arg1[%c33] : memref<42xf32, #tpu.memory_space<smem>>
    %109 = vector.broadcast %108 : f32 to vector<32x128xf32>
    %110 = arith.mulf %109, %103 : vector<32x128xf32>
    %111 = arith.addf %91, %110 : vector<32x128xf32>
    %c5 = arith.constant 5 : index
    %112 = memref.load %arg1[%c5] : memref<42xf32, #tpu.memory_space<smem>>
    %c13 = arith.constant 13 : index
    %113 = memref.load %arg1[%c13] : memref<42xf32, #tpu.memory_space<smem>>
    %c21 = arith.constant 21 : index
    %114 = memref.load %arg1[%c21] : memref<42xf32, #tpu.memory_space<smem>>
    %115 = vector.broadcast %112 : f32 to vector<32x128xf32>
    %116 = arith.mulf %115, %6 : vector<32x128xf32>
    %117 = vector.broadcast %113 : f32 to vector<32x128xf32>
    %118 = arith.mulf %117, %9 : vector<32x128xf32>
    %119 = arith.addf %116, %118 : vector<32x128xf32>
    %120 = vector.broadcast %114 : f32 to vector<32x128xf32>
    %121 = arith.addf %119, %120 : vector<32x128xf32>
    %cst_11 = arith.constant 0.000000e+00 : f32
    %122 = vector.broadcast %cst_11 : f32 to vector<32x128xf32>
    %123 = arith.maximumf %121, %122 : vector<32x128xf32>
    %c34 = arith.constant 34 : index
    %124 = memref.load %arg1[%c34] : memref<42xf32, #tpu.memory_space<smem>>
    %125 = vector.broadcast %124 : f32 to vector<32x128xf32>
    %126 = arith.mulf %125, %123 : vector<32x128xf32>
    %127 = arith.addf %107, %126 : vector<32x128xf32>
    %c35 = arith.constant 35 : index
    %128 = memref.load %arg1[%c35] : memref<42xf32, #tpu.memory_space<smem>>
    %129 = vector.broadcast %128 : f32 to vector<32x128xf32>
    %130 = arith.mulf %129, %123 : vector<32x128xf32>
    %131 = arith.addf %111, %130 : vector<32x128xf32>
    %c6 = arith.constant 6 : index
    %132 = memref.load %arg1[%c6] : memref<42xf32, #tpu.memory_space<smem>>
    %c14 = arith.constant 14 : index
    %133 = memref.load %arg1[%c14] : memref<42xf32, #tpu.memory_space<smem>>
    %c22 = arith.constant 22 : index
    %134 = memref.load %arg1[%c22] : memref<42xf32, #tpu.memory_space<smem>>
    %135 = vector.broadcast %132 : f32 to vector<32x128xf32>
    %136 = arith.mulf %135, %6 : vector<32x128xf32>
    %137 = vector.broadcast %133 : f32 to vector<32x128xf32>
    %138 = arith.mulf %137, %9 : vector<32x128xf32>
    %139 = arith.addf %136, %138 : vector<32x128xf32>
    %140 = vector.broadcast %134 : f32 to vector<32x128xf32>
    %141 = arith.addf %139, %140 : vector<32x128xf32>
    %cst_12 = arith.constant 0.000000e+00 : f32
    %142 = vector.broadcast %cst_12 : f32 to vector<32x128xf32>
    %143 = arith.maximumf %141, %142 : vector<32x128xf32>
    %c36 = arith.constant 36 : index
    %144 = memref.load %arg1[%c36] : memref<42xf32, #tpu.memory_space<smem>>
    %145 = vector.broadcast %144 : f32 to vector<32x128xf32>
    %146 = arith.mulf %145, %143 : vector<32x128xf32>
    %147 = arith.addf %127, %146 : vector<32x128xf32>
    %c37 = arith.constant 37 : index
    %148 = memref.load %arg1[%c37] : memref<42xf32, #tpu.memory_space<smem>>
    %149 = vector.broadcast %148 : f32 to vector<32x128xf32>
    %150 = arith.mulf %149, %143 : vector<32x128xf32>
    %151 = arith.addf %131, %150 : vector<32x128xf32>
    %c7 = arith.constant 7 : index
    %152 = memref.load %arg1[%c7] : memref<42xf32, #tpu.memory_space<smem>>
    %c15 = arith.constant 15 : index
    %153 = memref.load %arg1[%c15] : memref<42xf32, #tpu.memory_space<smem>>
    %c23 = arith.constant 23 : index
    %154 = memref.load %arg1[%c23] : memref<42xf32, #tpu.memory_space<smem>>
    %155 = vector.broadcast %152 : f32 to vector<32x128xf32>
    %156 = arith.mulf %155, %6 : vector<32x128xf32>
    %157 = vector.broadcast %153 : f32 to vector<32x128xf32>
    %158 = arith.mulf %157, %9 : vector<32x128xf32>
    %159 = arith.addf %156, %158 : vector<32x128xf32>
    %160 = vector.broadcast %154 : f32 to vector<32x128xf32>
    %161 = arith.addf %159, %160 : vector<32x128xf32>
    %cst_13 = arith.constant 0.000000e+00 : f32
    %162 = vector.broadcast %cst_13 : f32 to vector<32x128xf32>
    %163 = arith.maximumf %161, %162 : vector<32x128xf32>
    %c38 = arith.constant 38 : index
    %164 = memref.load %arg1[%c38] : memref<42xf32, #tpu.memory_space<smem>>
    %165 = vector.broadcast %164 : f32 to vector<32x128xf32>
    %166 = arith.mulf %165, %163 : vector<32x128xf32>
    %167 = arith.addf %147, %166 : vector<32x128xf32>
    %c39 = arith.constant 39 : index
    %168 = memref.load %arg1[%c39] : memref<42xf32, #tpu.memory_space<smem>>
    %169 = vector.broadcast %168 : f32 to vector<32x128xf32>
    %170 = arith.mulf %169, %163 : vector<32x128xf32>
    %171 = arith.addf %151, %170 : vector<32x128xf32>
    %c40 = arith.constant 40 : index
    %172 = memref.load %arg1[%c40] : memref<42xf32, #tpu.memory_space<smem>>
    %173 = vector.broadcast %172 : f32 to vector<32x128xf32>
    %174 = arith.addf %167, %173 : vector<32x128xf32>
    %c0_14 = arith.constant 0 : index
    %175 = arith.index_cast %3 : i32 to index
    %c0_15 = arith.constant 0 : index
    %176 = vector.load %arg3[%c0_14, %175, %c0_15] : memref<2x32x128xf32, #tpu.memory_space<vmem>>, vector<1x32x128xf32>
    %177 = vector.shape_cast %176 : vector<1x32x128xf32> to vector<32x128xf32>
    %178 = vector.shape_cast %174 : vector<32x128xf32> to vector<1x32x128xf32>
    tpu.vector_store %arg3[%c0_14, %175, %c0_15], %178 {strides = array<i32>} : memref<2x32x128xf32, #tpu.memory_space<vmem>>, vector<1x32x128xf32>,
    %c41 = arith.constant 41 : index
    %179 = memref.load %arg1[%c41] : memref<42xf32, #tpu.memory_space<smem>>
    %180 = vector.broadcast %179 : f32 to vector<32x128xf32>
    %181 = arith.addf %171, %180 : vector<32x128xf32>
    %c1_16 = arith.constant 1 : index
    %182 = arith.index_cast %3 : i32 to index
    %c0_17 = arith.constant 0 : index
    %183 = vector.load %arg3[%c1_16, %182, %c0_17] : memref<2x32x128xf32, #tpu.memory_space<vmem>>, vector<1x32x128xf32>
    %184 = vector.shape_cast %183 : vector<1x32x128xf32> to vector<32x128xf32>
    %185 = vector.shape_cast %181 : vector<32x128xf32> to vector<1x32x128xf32>
    tpu.vector_store %arg3[%c1_16, %182, %c0_17], %185 {strides = array<i32>} : memref<2x32x128xf32, #tpu.memory_space<vmem>>, vector<1x32x128xf32>,
    %c1_i32_18 = arith.constant 1 : i32
    return
  }
  func.func @transform_0(%arg0: i32, %arg1: memref<42xf32, #tpu.memory_space<smem>>) -> (i32, i32, i32) {
    %c0_i32 = arith.constant 0 : i32
    %c0_i32_0 = arith.constant 0 : i32
    %c0_i32_1 = arith.constant 0 : i32
    return %c0_i32, %arg0, %c0_i32_0 : i32, i32, i32
  }
  func.func @transform_1(%arg0: i32, %arg1: memref<42xf32, #tpu.memory_space<smem>>) -> (i32, i32, i32) {
    %c0_i32 = arith.constant 0 : i32
    %c0_i32_0 = arith.constant 0 : i32
    %c0_i32_1 = arith.constant 0 : i32
    return %c0_i32, %arg0, %c0_i32_0 : i32, i32, i32
  }
}

</mosaic_0001>

<bundles_post_ra>
// kernel: delta_nn_forward.1
= control target key start
LH: loop header
LB: loop body
LE: loop exit
PB: predicated region body
PF: predicated region fallthrough
CT: control target
= control target key end

     0   :  { %s1077_s0 = inlined_call_operand.vmem [shape: f32[42], index: 0, kind: input, shape index: {}]   ;;  %s1078_s1 = inlined_call_operand.vmem [shape: f32[2,32,128], index: 1, kind: input, shape index: {}]   ;;  %s1079_s2 = inlined_call_operand.vmem [shape: f32[2,32,128], index: 2, kind: output, shape index: {}]  }
   0x1   :  { %s7_s11 = sshll.u32 %s1077_s0, 4  ;;  %s8_s11 = int_to_ptr.vmem [resolvable:$true] %s7_s11 }
   0x2   :  { %s470_s12 = scalar_lea.vmem %s8_s11, 16  ;;  %p475_p1 = scmp.lt.s32.totalorder %s8_s11, %s8_s11 }
   0x3   :  { %p471_p0 = scmp.ne.s32.totalorder %s8_s11, %s470_s12  ;;  %p476_p2 = scmp.lt.s32.totalorder %s470_s12, %s470_s12 }
   0x5   :  { %p477_p3 = por %p476_p2, %p475_p1 }
   0x7   :  { %p478_p4 = pnand %p477_p3, %p471_p0 }
   0x9   :  { %481 = shalt.err (!%p478_p4)  }
   0xa   :  { %s484_s13 = smov [#allocation3]  }
   0xb   :  { %10 = dma.vmem_to_smem %s8_s11, 16, %s484_s13, [#allocation2] }
   0xc   :  { %482 = dma.done.wait [#allocation2], 16 }
   0xd   :  { %483 = vsyncadd [#allocation2], 4294967280 }
   0xe   :  { %12 = sfence }
   0xf   :  { %s25_s14 = sld [smem:[#allocation3]]  ;;  %v506_v0 = vld [vmem:[%s1078_s1] sm:$0xff]  ;;  %v511_v1 = vld [vmem:[%s1078_s1 + $0x8] sm:$0xff]  ;;  %v516_v2 = vld [vmem:[%s1078_s1 + $0x10] sm:$0xff] }
  0x10   :  { %s424_s15 = sld [smem:[#allocation3 + $0x8]]  ;;  %v521_v3 = vld [vmem:[%s1078_s1 + $0x20] sm:$0xff]  ;;  %v526_v4 = vld [vmem:[%s1078_s1 + $0x28] sm:$0xff]  ;;  %v531_v5 = vld [vmem:[%s1078_s1 + $0x30] sm:$0xff] }
  0x11   :  { %s425_s16 = sld [smem:[#allocation3 + $0x10]]  ;;  %v536_v7 = vld [vmem:[%s1078_s1 + $0x18] sm:$0xff] }
  0x12   :  { %s426_s17 = sld [smem:[#allocation3 + $0x18]]  ;;  %v541_v8 = vld [vmem:[%s1078_s1 + $0x38] sm:$0xff] }
  0x13   :  { %s428_s0 = sld [smem:[#allocation3 + $0x1]] }
  0x14   :  { %s429_s26 = sld [smem:[#allocation3 + $0x9]] }
  0x15   :  { %v28_v6 = vstv %s25_s14  ;;  %s430_s3 = sld [smem:[#allocation3 + $0x11]] }
  0x16   :  { %v29_v9 = vmul.f32 %v28_v6, %v506_v0  ;;  %v33_v10 = vstv %s424_s15  ;;  %s431_s8 = sld [smem:[#allocation3 + $0x1a]]  ;;  %v30_v11 = vmul.f32 %v28_v6, %v511_v1  ;;  %v31_v12 = vmul.f32 %v28_v6, %v516_v2 }
  0x17   :  { %v34_v13 = vmul.f32 %v521_v3, %v33_v10  ;;  %s433_s9 = sld [smem:[#allocation3 + $0x2]]  ;;  %v35_v14 = vmul.f32 %v526_v4, %v33_v10  ;;  %v36_v15 = vmul.f32 %v531_v5, %v33_v10  ;;  %v549_v16 = vstv %s425_s16 }
  0x18   :  { %v551_v17 = vstv %s426_s17  ;;  %s434_s1 = sld [smem:[#allocation3 + $0xa]]  ;;  %v554_v18 = vmul.f32 %v28_v6, %v536_v7  ;;  %v557_v19 = vmul.f32 %v541_v8, %v33_v10 }
  0x19   :  { %v38_v20 = vadd.f32 %v34_v13, %v29_v9  ;;  %v559_v21 = vstv %s428_s0  ;;  %s561_s10 = sld [smem:[#allocation3 + $0x12]]  ;;  %v39_v22 = vadd.f32 %v35_v14, %v30_v11  ;;  %v40_v23 = vadd.f32 %v36_v15, %v31_v12 }
  0x1a   :  { %v75_v24 = vmul.f32 %v559_v21, %v506_v0  ;;  %v565_v25 = vstv %s429_s26  ;;  %s436_s11 = sld [smem:[#allocation3 + $0x1c]]  ;;  %v76_v26 = vmul.f32 %v559_v21, %v511_v1  ;;  %v571_v27 = vmul.f32 %v559_v21, %v516_v2 }
  0x1b   :  { %v574_v28 = vadd.f32 %v549_v16, %v38_v20  ;;  %v80_v29 = vmul.f32 %v521_v3, %v565_v25  ;;  %v578_v30 = vstv %s430_s3  ;;  %s438_s12 = sld [smem:[#allocation3 + $0x3]]  ;;  %v581_v31 = vadd.f32 %v549_v16, %v39_v22 }
  0x1c   :  { %v583_v32 = vstv %s431_s8  ;;  %s439_s13 = sld [smem:[#allocation3 + $0xb]]  ;;  %v81_v33 = vmul.f32 %v526_v4, %v565_v25  ;;  %v588_v34 = vadd.f32 %v549_v16, %v40_v23  ;;  %v592_v35 = vmul.f32 %v531_v5, %v565_v25 }
  0x1d   :  { %1110 = vst [vmem:[#allocation5_spill] sm:$0xff] %v581_v31  ;;  %v1087_v36 = vmax.f32 %v574_v28, 0.0  ;;  %v84_v37 = vadd.f32 %v80_v29, %v75_v24  ;;  %v595_v38 = vstv %s433_s9  ;;  %s440_s14 = sld [smem:[#allocation3 + $0x13]]  ;;  %v1082_v39 = vmax.f32 %v581_v31, 0.0 }
  0x1e   :  { %v121_v40 = vmul.f32 %v595_v38, %v506_v0  ;;  %v600_v41 = vstv %s434_s1  ;;  %s441_s15 = sld [smem:[#allocation3 + $0x1e]]  ;;  %v85_v42 = vadd.f32 %v81_v33, %v76_v26  ;;  %v122_v43 = vmul.f32 %v595_v38, %v511_v1 }
  0x1f   :  { %v53_v44 = vmul.f32 %v551_v17, %v1087_v36  ;;  %v608_v45 = vadd.f32 %v578_v30, %v84_v37  ;;  %v126_v46 = vmul.f32 %v521_v3, %v600_v41  ;;  %v613_v47 = vstv %s561_s10  ;;  %s443_s16 = sld [smem:[#allocation3 + $0x4]] }
  0x20   :  { %v615_v48 = vstv %s436_s11  ;;  %s444_s17 = sld [smem:[#allocation3 + $0xc]]  ;;  %v54_v49 = vmul.f32 %v551_v17, %v1082_v39  ;;  %v621_v50 = vadd.f32 %v578_v30, %v85_v42  ;;  %v127_v51 = vmul.f32 %v526_v4, %v600_v41 }
  0x21   :  { %v1085_v52 = vmax.f32 %v608_v45, 0.0  ;;  %v130_v53 = vadd.f32 %v126_v46, %v121_v40  ;;  %v626_v54 = vstv %s438_s12  ;;  %s445_s18 = sld [smem:[#allocation3 + $0x14]] }
  0x22   :  { %1111 = vst [vmem:[#allocation6_spill] sm:$0xff] %v621_v50  ;;  %v167_v56 = vmul.f32 %v626_v54, %v506_v0  ;;  %v631_v57 = vstv %s439_s13  ;;  %s446_s19 = sld [smem:[#allocation3 + $0x20]]  ;;  %v1081_v58 = vmax.f32 %v621_v50, 0.0  ;;  %v131_v59 = vadd.f32 %v127_v51, %v122_v43 }
  0x23   :  { %v99_v60 = vmul.f32 %v583_v32, %v1085_v52  ;;  %v638_v61 = vadd.f32 %v613_v47, %v130_v53  ;;  %v172_v62 = vmul.f32 %v521_v3, %v631_v57  ;;  %v642_v63 = vstv %s440_s14  ;;  %s448_s0 = sld [smem:[#allocation3 + $0x5]] }
  0x24   :  { %v644_v6 = vstv %s441_s15  ;;  %s449_s20 = sld [smem:[#allocation3 + $0xd]]  ;;  %v100_v9 = vmul.f32 %v583_v32, %v1081_v58  ;;  %v650_v10 = vadd.f32 %v613_v47, %v131_v59  ;;  %v168_v11 = vmul.f32 %v626_v54, %v511_v1 }
  0x25   :  { %v103_v12 = vadd.f32 %v99_v60, %v53_v44  ;;  %v1084_v13 = vmax.f32 %v638_v61, 0.0  ;;  %v176_v14 = vadd.f32 %v172_v62, %v167_v56  ;;  %v655_v15 = vstv %s443_s16  ;;  %s450_s21 = sld [smem:[#allocation3 + $0x15]] }
  0x26   :  { %1112 = vst [vmem:[#allocation7_spill] sm:$0xff] %v650_v10  ;;  %v213_v20 = vmul.f32 %v655_v15, %v506_v0  ;;  %v659_v22 = vstv %s444_s17  ;;  %s451_s22 = sld [smem:[#allocation3 + $0x22]]  ;;  %v104_v23 = vadd.f32 %v100_v9, %v54_v49  ;;  %v1080_v24 = vmax.f32 %v650_v10, 0.0 }
  0x27   :  { %v145_v26 = vmul.f32 %v615_v48, %v1084_v13  ;;  %v666_v29 = vadd.f32 %v642_v63, %v176_v14  ;;  %v218_v33 = vmul.f32 %v521_v3, %v659_v22  ;;  %v670_v37 = vstv %s445_s18  ;;  %s453_s23 = sld [smem:[#allocation3 + $0x6]] }
  0x28   :  { %v672_v40 = vstv %s446_s19  ;;  %s454_s24 = sld [smem:[#allocation3 + $0xe]]  ;;  %v146_v42 = vmul.f32 %v615_v48, %v1080_v24  ;;  %v173_v43 = vmul.f32 %v526_v4, %v631_v57  ;;  %v214_v44 = vmul.f32 %v655_v15, %v511_v1 }
  0x29   :  { %1113 = vst [vmem:[#allocation8_spill] sm:$0xff] %v666_v29  ;;  %v149_v46 = vadd.f32 %v145_v26, %v103_v12  ;;  %v1083_v49 = vmax.f32 %v666_v29, 0.0  ;;  %v222_v51 = vadd.f32 %v218_v33, %v213_v20  ;;  %v682_v53 = vstv %s448_s0  ;;  %s455_s25 = sld [smem:[#allocation3 + $0x16]] }
  0x2a   :  { %v259_v56 = vmul.f32 %v682_v53, %v506_v0  ;;  %v686_v59 = vstv %s449_s20  ;;  %s456_s26 = sld [smem:[#allocation3 + $0x24]]  ;;  %v150_v60 = vadd.f32 %v146_v42, %v104_v23  ;;  %v177_v62 = vadd.f32 %v173_v43, %v168_v11 }
  0x2b   :  { %v191_v9 = vmul.f32 %v644_v6, %v1083_v49  ;;  %v692_v12 = vadd.f32 %v670_v37, %v222_v51  ;;  %v264_v14 = vmul.f32 %v521_v3, %v686_v59  ;;  %v696_v20 = vstv %s450_s21  ;;  %s458_s27 = sld [smem:[#allocation3 + $0x7]] }
  0x2c   :  { %v698_v26 = vstv %s451_s22  ;;  %s459_s28 = sld [smem:[#allocation3 + $0xf]]  ;;  %v701_v33 = vadd.f32 %v642_v63, %v177_v62  ;;  %v219_v11 = vmul.f32 %v526_v4, %v659_v22  ;;  %v260_v23 = vmul.f32 %v682_v53, %v511_v1 }
  0x2d   :  { %1114 = vst [vmem:[#allocation9_spill] sm:$0xff] %v692_v12  ;;  %v195_v42 = vadd.f32 %v191_v9, %v149_v46  ;;  %v1086_v43 = vmax.f32 %v692_v12, 0.0  ;;  %v268_v51 = vadd.f32 %v264_v14, %v259_v56  ;;  %v708_v24 = vstv %s453_s23  ;;  %s460_s29 = sld [smem:[#allocation3 + $0x17]] }
  0x2e   :  { %1115 = vst [vmem:[#allocation10_spill] sm:$0xff] %v701_v33  ;;  %v305_v58 = vmul.f32 %v708_v24, %v506_v0  ;;  %v712_v39 = vstv %s454_s24  ;;  %s461_s30 = sld [smem:[#allocation3 + $0x26]]  ;;  %v1091_v62 = vmax.f32 %v701_v33, 0.0  ;;  %v223_v49 = vadd.f32 %v219_v11, %v214_v44 }
  0x2f   :  { %v237_v13 = vmul.f32 %v672_v40, %v1086_v43  ;;  %v719_v46 = vadd.f32 %v696_v20, %v268_v51  ;;  %v310_v56 = vmul.f32 %v521_v3, %v712_v39  ;;  %v723_v9 = vstv %s455_s25  ;;  %s463_s3 = sld [smem:[#allocation3 + $0x28]] }
  0x30   :  { %v725_v14 = vstv %s456_s26  ;;  %v192_v52 = vmul.f32 %v644_v6, %v1091_v62  ;;  %v731_v44 = vadd.f32 %v670_v37, %v223_v49  ;;  %v265_v11 = vmul.f32 %v526_v4, %v686_v59  ;;  %s899_s8 = sld [smem:[#allocation3 + $0x19]] }
  0x31   :  { %1116 = vst [vmem:[#allocation11_spill] sm:$0xff] %v719_v46  ;;  %v241_v51 = vadd.f32 %v237_v13, %v195_v42  ;;  %v1093_v43 = vmax.f32 %v719_v46, 0.0  ;;  %v314_v36 = vadd.f32 %v310_v56, %v305_v58  ;;  %v736_v55 = vstv %s458_s27  ;;  %s919_s9 = sld [smem:[#allocation3 + $0x1b]] }
  0x32   :  { %1117 = vst [vmem:[#allocation12_spill] sm:$0xff] %v731_v44  ;;  %v351_v10 = vmul.f32 %v736_v55, %v506_v0  ;;  %v740_v50 = vstv %s459_s28  ;;  %v196_v33 = vadd.f32 %v192_v52, %v150_v60  ;;  %v1097_v62 = vmax.f32 %v731_v44, 0.0  ;;  %s924_s1 = sld [smem:[#allocation3 + $0x1d]] }
  0x33   :  { %v283_v49 = vmul.f32 %v698_v26, %v1093_v43  ;;  %v747_v31 = vadd.f32 %v723_v9, %v314_v36  ;;  %v356_v58 = vmul.f32 %v521_v3, %v740_v50  ;;  %v751_v13 = vstv %s460_s29  ;;  %s931_s10 = sld [smem:[#allocation3 + $0x1f]] }
  0x34   :  { %v753_v42 = vstv %s461_s30  ;;  %v238_v0 = vmul.f32 %v672_v40, %v1097_v62  ;;  %v269_v52 = vadd.f32 %v265_v11, %v260_v23  ;;  %v306_v60 = vmul.f32 %v708_v24, %v511_v1  ;;  %s941_s11 = sld [smem:[#allocation3 + $0x21]] }
  0x35   :  { %v287_v56 = vadd.f32 %v283_v49, %v241_v51  ;;  %v1098_v43 = vmax.f32 %v747_v31, 0.0  ;;  %v360_v36 = vadd.f32 %v356_v58, %v351_v10  ;;  %v761_v46 = vstv %s463_s3  ;;  %s951_s12 = sld [smem:[#allocation3 + $0x23]] }
  0x36   :  { %v242_v12 = vadd.f32 %v238_v0, %v196_v33  ;;  %v764_v3 = vadd.f32 %v696_v20, %v269_v52  ;;  %v311_v29 = vmul.f32 %v526_v4, %v712_v39  ;;  %v352_v62 = vmul.f32 %v736_v55, %v511_v1  ;;  %s962_s13 = sld [smem:[#allocation3 + $0x25]] }
  0x37   :  { %v329_v23 = vmul.f32 %v725_v14, %v1098_v43  ;;  %v774_v11 = vadd.f32 %v751_v13, %v360_v36  ;;  %v357_v10 = vmul.f32 %v526_v4, %v740_v50  ;;  %v1119_v33 = vmax.f32 %v588_v34, 0.0  ;;  %s462_s16 = sld [smem:[#allocation3 + $0x27]] }
  0x38   :  { %1118 = vst [vmem:[#allocation13_spill] sm:$0xff] %v764_v3  ;;  %v1100_v49 = vmax.f32 %v764_v3, 0.0  ;;  %v315_v58 = vadd.f32 %v311_v29, %v306_v60  ;;  %v86_v1 = vadd.f32 %v592_v35, %v571_v27  ;;  %v123_v0 = vmul.f32 %v595_v38, %v516_v2  ;;  %s464_s17 = sld [smem:[#allocation3 + $0x29]] }
  0x39   :  { %v55_v51 = vmul.f32 %v551_v17, %v1119_v33  ;;  %v333_v52 = vadd.f32 %v329_v23, %v287_v56  ;;  %v1102_v36 = vmax.f32 %v774_v11, 0.0  ;;  %v361_v43 = vadd.f32 %v357_v10, %v352_v62 }
  0x3a   :  { %v128_v4 = vmul.f32 %v531_v5, %v600_v41  ;;  %v284_v33 = vmul.f32 %v698_v26, %v1100_v49  ;;  %v793_v44 = vadd.f32 %v723_v9, %v315_v58  ;;  %v796_v29 = vadd.f32 %v578_v30, %v86_v1 }
  0x3b   :  { %v169_v27 = vmul.f32 %v626_v54, %v516_v2  ;;  %v375_v35 = vmul.f32 %v753_v42, %v1102_v36  ;;  %v804_v62 = vadd.f32 %v751_v13, %v361_v43  ;;  %v174_v56 = vmul.f32 %v531_v5, %v631_v57 }
  0x3c   :  { %1120 = vst [vmem:[#allocation14_spill] sm:$0xff] %v793_v44  ;;  %v132_v60 = vadd.f32 %v128_v4, %v123_v0  ;;  %v288_v23 = vadd.f32 %v284_v33, %v242_v12  ;;  %v1103_v10 = vmax.f32 %v793_v44, 0.0  ;;  %v1104_v58 = vmax.f32 %v796_v29, 0.0 }
  0x3d   :  { %1121 = vst [vmem:[#allocation15_spill] sm:$0xff] %v804_v62  ;;  %v215_v1 = vmul.f32 %v655_v15, %v516_v2  ;;  %v379_v49 = vadd.f32 %v375_v35, %v333_v52  ;;  %v1106_v3 = vmax.f32 %v804_v62, 0.0  ;;  %v178_v43 = vadd.f32 %v174_v56, %v169_v27 }
  0x3e   :  { %v814_v36 = vadd.f32 %v613_v47, %v132_v60  ;;  %v330_v0 = vmul.f32 %v725_v14, %v1103_v10  ;;  %v101_v12 = vmul.f32 %v583_v32, %v1104_v58  ;;  %v220_v4 = vmul.f32 %v531_v5, %v659_v22 }
  0x3f   :  { %v261_v52 = vmul.f32 %v682_v53, %v516_v2  ;;  %v395_v33 = vadd.f32 %v761_v46, %v379_v49  ;;  %v376_v27 = vmul.f32 %v753_v42, %v1106_v3  ;;  %v832_v60 = vadd.f32 %v642_v63, %v178_v43 }
  0x40   :  { %1122 = vst [vmem:[#allocation16_spill] sm:$0xff] %v814_v36  ;;  %v1107_v35 = vmax.f32 %v814_v36, 0.0  ;;  %v334_v56 = vadd.f32 %v330_v0, %v288_v23  ;;  %v105_v10 = vadd.f32 %v101_v12, %v55_v51  ;;  %v224_v58 = vadd.f32 %v220_v4, %v215_v1 }
  0x41   :  { %v266_v44 = vmul.f32 %v531_v5, %v686_v59  ;;  %399 = vst [vmem:[%s1079_s2] sm:$0xff] %v395_v33  ;;  %v187_v3 = vmax.f32 %v832_v60, 0.0  ;;  %v307_v43 = vmul.f32 %v708_v24, %v516_v2  ;;  %v312_v51 = vmul.f32 %v531_v5, %v712_v39 }
  0x42   :  { %v147_v49 = vmul.f32 %v615_v48, %v1107_v35  ;;  %v380_v23 = vadd.f32 %v376_v27, %v334_v56  ;;  %v848_v1 = vadd.f32 %v670_v37, %v224_v58  ;;  %v353_v12 = vmul.f32 %v736_v55, %v516_v2 }
  0x43   :  { %v270_v0 = vadd.f32 %v266_v44, %v261_v52  ;;  %v193_v33 = vmul.f32 %v644_v6, %v187_v3  ;;  %v316_v35 = vadd.f32 %v312_v51, %v307_v43  ;;  %v358_v62 = vmul.f32 %v531_v5, %v740_v50 }
  0x44   :  { %v151_v4 = vadd.f32 %v147_v49, %v105_v10  ;;  %v396_v36 = vadd.f32 %v761_v46, %v380_v23  ;;  %v233_v27 = vmax.f32 %v848_v1, 0.0  ;;  %v41_v44 = vadd.f32 %v557_v19, %v554_v18 }
  0x45   :  { %v860_v58 = vadd.f32 %v696_v20, %v270_v0  ;;  %v865_v10 = vadd.f32 %v723_v9, %v316_v35  ;;  %v362_v52 = vadd.f32 %v358_v62, %v353_v12  ;;  %v78_v56 = vmul.f32 %v559_v21, %v536_v7 }
  0x46   :  { %v197_v2 = vadd.f32 %v193_v33, %v151_v4  ;;  %400 = vst [vmem:[%s1079_s2 + $0x8] sm:$0xff] %v396_v36  ;;  %v239_v5 = vmul.f32 %v672_v40, %v233_v27  ;;  %v877_v18 = vadd.f32 %v549_v16, %v41_v44  ;;  %v83_v19 = vmul.f32 %v541_v8, %v565_v25 }
  0x47   :  { %v279_v49 = vmax.f32 %v860_v58, 0.0  ;;  %v325_v62 = vmax.f32 %v865_v10, 0.0  ;;  %v883_v21 = vadd.f32 %v751_v13, %v362_v52  ;;  %v124_v36 = vmul.f32 %v595_v38, %v536_v7 }
  0x48   :  { %v129_v35 = vmul.f32 %v541_v8, %v600_v41  ;;  %v243_v43 = vadd.f32 %v239_v5, %v197_v2  ;;  %v50_v51 = vmax.f32 %v877_v18, 0.0  ;;  %v87_v23 = vadd.f32 %v83_v19, %v78_v56 }
  0x49   :  { %v285_v16 = vmul.f32 %v698_v26, %v279_v49  ;;  %v331_v25 = vmul.f32 %v725_v14, %v325_v62  ;;  %v371_v0 = vmax.f32 %v883_v21, 0.0  ;;  %v170_v38 = vmul.f32 %v626_v54, %v536_v7 }
  0x4a   :  { %v133_v12 = vadd.f32 %v129_v35, %v124_v36  ;;  %v56_v4 = vmul.f32 %v551_v17, %v50_v51  ;;  %v905_v33 = vadd.f32 %v578_v30, %v87_v23  ;;  %v175_v44 = vmul.f32 %v541_v8, %v631_v57 }
  0x4b   :  { %v289_v41 = vadd.f32 %v285_v16, %v243_v43  ;;  %v377_v2 = vmul.f32 %v753_v42, %v371_v0  ;;  %v216_v54 = vmul.f32 %v655_v15, %v536_v7  ;;  %v221_v56 = vmul.f32 %v541_v8, %v659_v22 }
  0x4c   :  { %v913_v52 = vadd.f32 %v613_v47, %v133_v12  ;;  %v96_v30 = vmax.f32 %v905_v33, 0.0  ;;  %v179_v5 = vadd.f32 %v175_v44, %v170_v38  ;;  %v262_v57 = vmul.f32 %v682_v53, %v536_v7 }
  0x4d   :  { %v335_v17 = vadd.f32 %v331_v25, %v289_v41  ;;  %v225_v19 = vadd.f32 %v221_v56, %v216_v54  ;;  %v267_v15 = vmul.f32 %v541_v8, %v686_v59  ;;  %v308_v22 = vmul.f32 %v708_v24, %v536_v7 }
  0x4e   :  { %v142_v47 = vmax.f32 %v913_v52, 0.0  ;;  %v102_v35 = vmul.f32 %v583_v32, %v96_v30  ;;  %v937_v53 = vadd.f32 %v642_v63, %v179_v5  ;;  %v313_v43 = vmul.f32 %v541_v8, %v712_v39 }
  0x4f   :  { %v381_v36 = vadd.f32 %v377_v2, %v335_v17  ;;  %v947_v59 = vadd.f32 %v670_v37, %v225_v19  ;;  %v271_v16 = vadd.f32 %v267_v15, %v262_v57  ;;  %v354_v32 = vmul.f32 %v736_v55, %v536_v7 }
  0x50   :  { %v148_v24 = vmul.f32 %v615_v48, %v142_v47  ;;  %v106_v23 = vadd.f32 %v102_v35, %v56_v4  ;;  %v188_v39 = vmax.f32 %v937_v53, 0.0  ;;  %v317_v25 = vadd.f32 %v313_v43, %v308_v22 }
  0x51   :  { %v397_v63 = vadd.f32 %v761_v46, %v381_v36  ;;  %v234_v12 = vmax.f32 %v947_v59, 0.0  ;;  %v957_v48 = vadd.f32 %v696_v20, %v271_v16  ;;  %v359_v37 = vmul.f32 %v541_v8, %v740_v50  ;;  %v1126_v36 = vld [vmem:[#allocation8_spill] sm:$0xff] }
  0x52   :  { %v62_v38 = vstv %s899_s8  ;;  %v152_v7 = vadd.f32 %v148_v24, %v106_v23  ;;  %v194_v55 = vmul.f32 %v644_v6, %v188_v39  ;;  %v971_v20 = vadd.f32 %v723_v9, %v317_v25 }
  0x53   :  { %401 = vst [vmem:[%s1079_s2 + $0x10] sm:$0xff] %v397_v63  ;;  %v1123_v41 = vmax.f32 %v574_v28, 0.0  ;;  %v240_v50 = vmul.f32 %v672_v40, %v234_v12  ;;  %v280_v4 = vmax.f32 %v957_v48, 0.0  ;;  %v363_v44 = vadd.f32 %v359_v37, %v354_v32  ;;  %v1128_v63 = vld [vmem:[#allocation9_spill] sm:$0xff] }
  0x54   :  { %v108_v2 = vstv %s919_s9  ;;  %v198_v54 = vadd.f32 %v194_v55, %v152_v7  ;;  %v326_v6 = vmax.f32 %v971_v20, 0.0  ;;  %v1124_v9 = vmax.f32 %v608_v45, 0.0  ;;  %v1130_v55 = vld [vmem:[#allocation11_spill] sm:$0xff] }
  0x55   :  { %v63_v8 = vmul.f32 %v62_v38, %v1123_v41  ;;  %v154_v17 = vstv %s924_s1  ;;  %v286_v28 = vmul.f32 %v698_v26, %v280_v4  ;;  %v988_v40 = vadd.f32 %v751_v13, %v363_v44 }
  0x56   :  { %v109_v56 = vmul.f32 %v108_v2, %v1124_v9  ;;  %v1125_v5 = vmax.f32 %v638_v61, 0.0  ;;  %v200_v19 = vstv %s931_s10  ;;  %v244_v15 = vadd.f32 %v240_v50, %v198_v54  ;;  %v1132_v50 = vld [vmem:[#allocation5_spill] sm:$0xff] }
  0x57   :  { %v332_v45 = vmul.f32 %v725_v14, %v326_v6  ;;  %v1127_v35 = vmax.f32 %v1126_v36, 0.0  ;;  %v372_v24 = vmax.f32 %v988_v40, 0.0  ;;  %v246_v16 = vstv %s941_s11 }
  0x58   :  { %v155_v57 = vmul.f32 %v154_v17, %v1125_v5  ;;  %v113_v22 = vadd.f32 %v109_v56, %v63_v8  ;;  %v292_v26 = vstv %s951_s12  ;;  %v290_v32 = vadd.f32 %v286_v28, %v244_v15  ;;  %v1134_v56 = vld [vmem:[#allocation6_spill] sm:$0xff] }
  0x59   :  { %v201_v43 = vmul.f32 %v200_v19, %v1127_v35  ;;  %v1129_v23 = vmax.f32 %v1128_v63, 0.0  ;;  %v378_v25 = vmul.f32 %v753_v42, %v372_v24  ;;  %v338_v37 = vstv %s962_s13 }
  0x5a   :  { %v159_v13 = vadd.f32 %v155_v57, %v113_v22  ;;  %v336_v7 = vadd.f32 %v332_v45, %v290_v32  ;;  %v1131_v41 = vmax.f32 %v1130_v55, 0.0  ;;  %v1133_v44 = vmax.f32 %v1132_v50, 0.0  ;;  %v1136_v57 = vld [vmem:[#allocation7_spill] sm:$0xff]  ;;  %v1139_v32 = vld [vmem:[#allocation10_spill] sm:$0xff] }
  0x5b   :  { %v247_v61 = vmul.f32 %v246_v16, %v1129_v23  ;;  %v384_v9 = vstv %s462_s16  ;;  %v1135_v28 = vmax.f32 %v1134_v56, 0.0  ;;  %v1137_v15 = vmax.f32 %v1136_v57, 0.0 }
  0x5c   :  { %v205_v14 = vadd.f32 %v201_v43, %v159_v13  ;;  %v293_v8 = vmul.f32 %v292_v26, %v1131_v41  ;;  %v64_v54 = vmul.f32 %v62_v38, %v1133_v44  ;;  %v382_v36 = vadd.f32 %v378_v25, %v336_v7  ;;  %v1144_v7 = vld [vmem:[#allocation16_spill] sm:$0xff] }
  0x5d   :  { %v110_v5 = vmul.f32 %v108_v2, %v1135_v28  ;;  %v156_v22 = vmul.f32 %v154_v17, %v1137_v15  ;;  %v1138_v42 = vmax.f32 %v747_v31, 0.0  ;;  %v404_v45 = vstv %s464_s17 }
  0x5e   :  { %v251_v35 = vadd.f32 %v247_v61, %v205_v14  ;;  %v1140_v13 = vmax.f32 %v1139_v32, 0.0  ;;  %v1141_v55 = vmax.f32 %v588_v34, 0.0  ;;  %v1142_v50 = vmax.f32 %v796_v29, 0.0  ;;  %v1148_v29 = vld [vmem:[#allocation13_spill] sm:$0xff] }
  0x5f   :  { %v339_v63 = vmul.f32 %v338_v37, %v1138_v42  ;;  %v114_v43 = vadd.f32 %v110_v5, %v64_v54  ;;  %v398_v56 = vadd.f32 %v761_v46, %v382_v36  ;;  %v1143_v25 = vmax.f32 %v774_v11, 0.0  ;;  %v1146_v54 = vld [vmem:[#allocation12_spill] sm:$0xff] }
  0x60   :  { %v202_v23 = vmul.f32 %v200_v19, %v1140_v13  ;;  %v65_v41 = vmul.f32 %v62_v38, %v1141_v55  ;;  %v111_v44 = vmul.f32 %v108_v2, %v1142_v50  ;;  %v297_v28 = vadd.f32 %v293_v8, %v251_v35  ;;  %v1150_v13 = vld [vmem:[#allocation14_spill] sm:$0xff] }
  0x61   :  { %v385_v61 = vmul.f32 %v384_v9, %v1143_v25  ;;  %v1145_v31 = vmax.f32 %v1144_v7, 0.0  ;;  %v160_v57 = vadd.f32 %v156_v22, %v114_v43  ;;  %v1147_v5 = vmax.f32 %v1146_v54, 0.0  ;;  %402 = vst [vmem:[%s1079_s2 + $0x18] sm:$0xff] %v398_v56 }
  0x62   :  { %v115_v42 = vadd.f32 %v111_v44, %v65_v41  ;;  %v203_v34 = vmul.f32 %v200_v19, %v187_v3  ;;  %v343_v46 = vadd.f32 %v339_v63, %v297_v28  ;;  %v1149_v8 = vmax.f32 %v1148_v29, 0.0 }
  0x63   :  { %v157_v14 = vmul.f32 %v154_v17, %v1145_v31  ;;  %v248_v15 = vmul.f32 %v246_v16, %v1147_v5  ;;  %v249_v36 = vmul.f32 %v246_v16, %v233_v27  ;;  %v66_v22 = vmul.f32 %v62_v38, %v50_v51  ;;  %v1152_v38 = vld [vmem:[#allocation15_spill] sm:$0xff] }
  0x64   :  { %v294_v11 = vmul.f32 %v292_v26, %v1149_v8  ;;  %v206_v35 = vadd.f32 %v202_v23, %v160_v57  ;;  %v112_v60 = vmul.f32 %v108_v2, %v96_v30  ;;  %v158_v3 = vmul.f32 %v154_v17, %v142_v47 }
  0x65   :  { %v161_v43 = vadd.f32 %v157_v14, %v115_v42  ;;  %v389_v32 = vadd.f32 %v385_v61, %v343_v46  ;;  %v1151_v63 = vmax.f32 %v1150_v13, 0.0  ;;  %v295_v41 = vmul.f32 %v292_v26, %v279_v49 }
  0x66   :  { %v252_v1 = vadd.f32 %v248_v15, %v206_v35  ;;  %v116_v50 = vadd.f32 %v112_v60, %v66_v22  ;;  %v204_v18 = vmul.f32 %v200_v19, %v188_v39  ;;  %v1153_v33 = vmax.f32 %v1152_v38, 0.0 }
  0x67   :  { %v340_v55 = vmul.f32 %v338_v37, %v1151_v63  ;;  %v207_v27 = vadd.f32 %v203_v34, %v161_v43  ;;  %v405_v51 = vadd.f32 %v404_v45, %v389_v32  ;;  %v341_v52 = vmul.f32 %v338_v37, %v325_v62 }
  0x68   :  { %v386_v30 = vmul.f32 %v384_v9, %v1153_v33  ;;  %v298_v47 = vadd.f32 %v294_v11, %v252_v1  ;;  %v162_v17 = vadd.f32 %v158_v3, %v116_v50  ;;  %v250_v58 = vmul.f32 %v246_v16, %v234_v12 }
  0x69   :  { %v253_v2 = vadd.f32 %v249_v36, %v207_v27  ;;  %465 = vst [vmem:[%s1079_s2 + $0x20] sm:$0xff] %v405_v51  ;;  %v387_v49 = vmul.f32 %v384_v9, %v371_v0  ;;  %v296_v10 = vmul.f32 %v292_v26, %v280_v4  ;;  %v342_v59 = vmul.f32 %v338_v37, %v326_v6 }
  0x6a   :  { %v344_v53 = vadd.f32 %v340_v55, %v298_v47  ;;  %v208_v19 = vadd.f32 %v204_v18, %v162_v17  ;;  %v388_v28 = vmul.f32 %v384_v9, %v372_v24 }
  0x6b   :  { %v299_v39 = vadd.f32 %v295_v41, %v253_v2 }
  0x6c   :  { %v390_v62 = vadd.f32 %v386_v30, %v344_v53  ;;  %v254_v44 = vadd.f32 %v250_v58, %v208_v19 }
  0x6d   :  { %v345_v23 = vadd.f32 %v341_v52, %v299_v39 }
  0x6e   :  { %v406_v12 = vadd.f32 %v404_v45, %v390_v62  ;;  %v300_v56 = vadd.f32 %v296_v10, %v254_v44 }
  0x6f   :  { %v391_v16 = vadd.f32 %v387_v49, %v345_v23 }
  0x70   :  { %466 = vst [vmem:[%s1079_s2 + $0x28] sm:$0xff] %v406_v12  ;;  %v346_v0 = vadd.f32 %v342_v59, %v300_v56 }
  0x71   :  { %v407_v21 = vadd.f32 %v404_v45, %v391_v16 }
  0x72   :  { %v392_v48 = vadd.f32 %v388_v28, %v346_v0 }
  0x73   :  { %467 = vst [vmem:[%s1079_s2 + $0x30] sm:$0xff] %v407_v21 }
  0x74   :  { %v408_v4 = vadd.f32 %v404_v45, %v392_v48 }
  0x76   :  { %468 = vst [vmem:[%s1079_s2 + $0x38] sm:$0xff] %v408_v4 }

</bundles_post_ra>
